<compile_context>
chip_gen: v5e
topology: v5e:2x2
jax: 0.10.0
libtpu: 0.0.40
codegen_flags: <defaults>
</compile_context>

<pallas_src>
import jax
import jax.numpy as jnp
from jax.experimental import pallas as pl
from jax.experimental.pallas import tpu as pltpu


def _round_up(x: int, m: int) -> int:
    return (x + m - 1) // m * m


def _pad_feature_dim(d: int) -> int:
    # 256-alignment fills full 2x256x256 MXU passes on v6e/v7x; for tiny dims
    # 128 (lane width) is enough and avoids pointless padding.
    return _round_up(d, 128) if d <= 128 else _round_up(d, 256)


def _pick_kff_tile(dff_p: int) -> int:
    # Largest d_ff chunk <= 1024 that divides the padded d_ff (keeps the W1/W2
    # chunk + relu intermediate footprint bounded on 64-MiB-VMEM parts).
    for cand in (1024, 512, 256, 128):
        if cand <= dff_p and dff_p % cand == 0:
            return cand
    return dff_p


def _pff_kernel(x_ref, w1_ref, b1_ref, w2_ref, b2_ref, o_ref, acc_ref):
    # x_ref : (tm, dm_p)  bf16      w1_ref: (dm_p, tkff) bf16   b1_ref: (1, tkff) f32
    # w2_ref: (tkff, dm_p) bf16     b2_ref: (1, dm_p)   f32
    # o_ref : (tm, dm_p)  bf16      acc_ref: (tm, dm_p) f32 scratch
    k = pl.program_id(1)

    @pl.when(k == 0)
    def _():
        acc_ref[...] = jnp.zeros_like(acc_ref)

    # First linear (d_ff chunk) + bias + ReLU, all in f32 on the VPU epilogue.
    h = jnp.dot(x_ref[...], w1_ref[...], preferred_element_type=jnp.float32)
    h = jnp.maximum(h + b1_ref[...], 0.0)

    # Second linear: partial sum over this d_ff chunk, accumulated in f32.
    acc_ref[...] += jnp.dot(h.astype(w2_ref.dtype), w2_ref[...],
                            preferred_element_type=jnp.float32)

    @pl.when(k == pl.num_programs(1) - 1)
    def _():
        o_ref[...] = (acc_ref[...] + b2_ref[...]).astype(o_ref.dtype)


def positionwise_feed_forward(x, w1, b1, w2, b2, *, tm=256,
                              compute_dtype=jnp.bfloat16,
                              out_dtype=jnp.bfloat16):
    """x: (..., d_model). w1: (d_model, d_ff), w2: (d_ff, d_model) (in, out) layout.

    Matches PyTorch linear2(relu(linear1(x))) with bf16 matmul operands,
    f32 accumulation/epilogue, bf16 output writeback.
    """
    orig_shape = x.shape
    d_model = orig_shape[-1]
    d_ff = w1.shape[1]
    assert w1.shape == (d_model, d_ff) and w2.shape == (d_ff, d_model)
    assert b1.shape == (d_ff,) and b2.shape == (d_model,)

    x2d = x.reshape(-1, d_model)
    M = x2d.shape[0]

    # Padded geometry: features to MXU-friendly multiples, rows to the tile.
    dm_p = _pad_feature_dim(d_model)
    dff_p = _pad_feature_dim(d_ff)
    tkff = _pick_kff_tile(dff_p)
    tm = _round_up(tm, 8)
    tm_eff = min(tm, _round_up(M, 8))      # don't over-pad tiny inputs
    m_p = _round_up(M, tm_eff)

    # Pad + cast directly in the compute dtype (no f32 staging pass over HBM).
    # TODO(synk): if weights are static across calls, hoist this prep out of
    # the per-call path.
    xp = jnp.zeros((m_p, dm_p), compute_dtype).at[:M, :d_model].set(
        x2d.astype(compute_dtype))
    w1p = jnp.zeros((dm_p, dff_p), compute_dtype).at[:d_model, :d_ff].set(
        w1.astype(compute_dtype))
    w2p = jnp.zeros((dff_p, dm_p), compute_dtype).at[:d_ff, :d_model].set(
        w2.astype(compute_dtype))
    b1p = jnp.zeros((1, dff_p), jnp.float32).at[0, :d_ff].set(
        b1.astype(jnp.float32))
    b2p = jnp.zeros((1, dm_p), jnp.float32).at[0, :d_model].set(
        b2.astype(jnp.float32))

    # ---- VMEM budget: model the real per-step footprint, cap at device VMEM.
    bpe_c = jnp.dtype(compute_dtype).itemsize
    bpe_o = jnp.dtype(out_dtype).itemsize
    est = (2 * tm_eff * dm_p * bpe_c            # x tile (double-buffered)
           + 2 * dm_p * tkff * bpe_c            # W1 chunk (double-buffered)
           + 2 * tkff * dm_p * bpe_c            # W2 chunk (double-buffered)
           + 2 * (tkff + dm_p) * 4              # biases (f32)
           + 2 * tm_eff * dm_p * bpe_o          # output tile (double-buffered)
           + tm_eff * dm_p * 4                  # f32 accumulator scratch
           + tm_eff * tkff * (4 + bpe_c)        # relu intermediate f32 + bf16 copy
           + tm_eff * dm_p * 4)                 # pre-accumulate f32 matmul tile
    try:
        vmem_cap = int(pltpu.get_tpu_info().vmem_capacity_bytes)
    except Exception:
        vmem_cap = 64 << 20                     # conservative (v7x per-TC VMEM)
    vmem_limit = int(min(max(int(1.5 * est) + (4 << 20), 32 << 20),
                         int(0.85 * vmem_cap)))

    # ---- Cost hint for XLA's scheduler.
    flops = 4 * m_p * dm_p * dff_p              # two matmuls, 2*M*K*N each
    bytes_accessed = (xp.size * bpe_c + w1p.size * bpe_c + w2p.size * bpe_c
                      + b1p.size * 4 + b2p.size * 4 + m_p * dm_p * bpe_o)
    cost = pl.CostEstimate(flops=flops, transcendentals=0,
                           bytes_accessed=bytes_accessed)

    out = pl.pallas_call(
        _pff_kernel,
        out_shape=jax.ShapeDtypeStruct((m_p, dm_p), out_dtype),
        grid_spec=pltpu.PrefetchScalarGridSpec(
            num_scalar_prefetch=0,
            grid=(m_p // tm_eff, dff_p // tkff),      # (row tiles, d_ff chunks)
            in_specs=[
                pl.BlockSpec((tm_eff, dm_p), lambda i, k: (i, 0)),   # x rows
                pl.BlockSpec((dm_p, tkff), lambda i, k: (0, k)),     # W1 chunk
                pl.BlockSpec((1, tkff), lambda i, k: (0, k)),        # b1 chunk
                pl.BlockSpec((tkff, dm_p), lambda i, k: (k, 0)),     # W2 chunk
                pl.BlockSpec((1, dm_p), lambda i, k: (0, 0)),        # b2
            ],
            out_specs=pl.BlockSpec((tm_eff, dm_p), lambda i, k: (i, 0)),
            scratch_shapes=[pltpu.VMEM((tm_eff, dm_p), jnp.float32)],
        ),
        compiler_params=pltpu.CompilerParams(
            dimension_semantics=("parallel", "arbitrary"),
            vmem_limit_bytes=vmem_limit,
        ),
        cost_estimate=cost,
    )(xp, w1p, b1p, w2p, b2p)

    out = out[:M, :d_model].astype(x.dtype)
    return out.reshape(orig_shape)


def init_params(key, d_model, d_ff, dtype=jnp.float32):
    """nn.Linear-style uniform(-1/sqrt(fan_in), 1/sqrt(fan_in)) init; weights (in, out)."""
    k1, k2, k3, k4 = jax.random.split(key, 4)
    lim1 = 1.0 / (d_model ** 0.5)
    lim2 = 1.0 / (d_ff ** 0.5)
    w1 = jax.random.uniform(k1, (d_model, d_ff), dtype, -lim1, lim1)
    b1 = jax.random.uniform(k2, (d_ff,), dtype, -lim1, lim1)
    w2 = jax.random.uniform(k3, (d_ff, d_model), dtype, -lim2, lim2)
    b2 = jax.random.uniform(k4, (d_model,), dtype, -lim2, lim2)
    return w1, b1, w2, b2


if __name__ == "__main__":
    key = jax.random.PRNGKey(0)
    batch, seq, d_model, d_ff = 2, 8, 32, 64

    kx, kp = jax.random.split(key)
    x = jax.random.normal(kx, (batch, seq, d_model), dtype=jnp.float32)
    w1, b1, w2, b2 = init_params(kp, d_model, d_ff)

    y = positionwise_feed_forward(x, w1, b1, w2, b2)
    y = jax.block_until_ready(y)
    assert y.shape == x.shape

    # Reference 1: same quantization points as the kernel (bf16 matmul operands,
    # f32 accumulation + epilogue, bf16 output rounding) -> tight tolerance.
    bf = lambda a: a.astype(jnp.bfloat16).astype(jnp.float32)
    h_ref = jnp.maximum(bf(x) @ bf(w1) + b1, 0.0)
    ref_q = bf(bf(h_ref) @ bf(w2) + b2)
    assert jnp.allclose(y, ref_q, atol=2e-2, rtol=2e-2), "mismatch vs bf16 reference"

    # Reference 2: pure f32 math (PyTorch forward) -> loose tolerance for bf16 quantization.
    ref_f32 = jnp.maximum(x @ w1 + b1, 0.0) @ w2 + b2
    assert jnp.allclose(y, ref_f32, atol=5e-2, rtol=5e-2), "mismatch vs f32 reference"

    print("KERNEL_OK")
</pallas_src>

<mosaic_0001>
module attributes {stable_mosaic.version = 11 : i64} {
  func.func @_pff_kernel(%arg0: i32, %arg1: i32, %arg2: memref<16x128xbf16, #tpu.memory_space<vmem>>, %arg3: memref<128x128xbf16, #tpu.memory_space<vmem>>, %arg4: memref<1x128xf32, #tpu.memory_space<vmem>>, %arg5: memref<128x128xbf16, #tpu.memory_space<vmem>>, %arg6: memref<1x128xf32, #tpu.memory_space<vmem>>, %arg7: memref<16x128xbf16, #tpu.memory_space<vmem>>, %arg8: memref<16x128xf32, #tpu.memory_space<vmem>>) attributes {dimension_semantics = [#tpu.dimension_semantics<parallel>, #tpu.dimension_semantics<arbitrary>], iteration_bounds = array<i64: 1, 1>, scalar_prefetch = 0 : i64, scratch_operands = 1 : i64, tpu.core_type = #tpu.core_type<tc>, window_params = [{transform_indices = @transform_0, window_bounds = array<i64: 16, 128>}, {transform_indices = @transform_1, window_bounds = array<i64: 128, 128>}, {transform_indices = @transform_2, window_bounds = array<i64: 1, 128>}, {transform_indices = @transform_3, window_bounds = array<i64: 128, 128>}, {pipeline_mode = #tpu.pipeline_mode<synchronous>, transform_indices = @transform_4, window_bounds = array<i64: 1, 128>}, {transform_indices = @transform_5, window_bounds = array<i64: 16, 128>}]} {
    %c0_i32 = arith.constant 0 : i32
    %0 = arith.cmpi eq, %arg1, %c0_i32 : i32
    %1 = arith.extui %0 : i1 to i32
    %c0_i32_0 = arith.constant 0 : i32
    %2 = arith.cmpi ne, %1, %c0_i32_0 : i32
    scf.if %2 {
      %cst_16 = arith.constant 0.000000e+00 : f32
      %20 = vector.broadcast %cst_16 : f32 to vector<16x128xf32>
      %c0_17 = arith.constant 0 : index
      %c0_18 = arith.constant 0 : index
      %21 = vector.load %arg8[%c0_17, %c0_18] : memref<16x128xf32, #tpu.memory_space<vmem>>, vector<16x128xf32>
      tpu.vector_store %arg8[%c0_17, %c0_18], %20 {strides = array<i32>} : memref<16x128xf32, #tpu.memory_space<vmem>>, vector<16x128xf32>,
    } else {
    }
    %c0 = arith.constant 0 : index
    %c0_1 = arith.constant 0 : index
    %3 = vector.load %arg2[%c0, %c0_1] : memref<16x128xbf16, #tpu.memory_space<vmem>>, vector<16x128xbf16>
    %c0_2 = arith.constant 0 : index
    %c0_3 = arith.constant 0 : index
    %4 = vector.load %arg3[%c0_2, %c0_3] : memref<128x128xbf16, #tpu.memory_space<vmem>>, vector<128x128xbf16>
    %cst = arith.constant dense<0.000000e+00> : vector<16x128xf32>
    %5 = tpu.matmul %3, %4, %cst {dimension_numbers = #tpu.dot_dimension_numbers<[1], [0], [0], [1], [0, 0, 1, 1], [], []>} : vector<16x128xbf16>, vector<128x128xbf16>, vector<16x128xf32> -> vector<16x128xf32>
    %c0_4 = arith.constant 0 : index
    %c0_5 = arith.constant 0 : index
    %6 = vector.load %arg4[%c0_4, %c0_5] : memref<1x128xf32, #tpu.memory_space<vmem>>, vector<1x128xf32>
    %7 = vector.broadcast %6 : vector<1x128xf32> to vector<16x128xf32>
    %8 = arith.addf %5, %7 : vector<16x128xf32>
    %cst_6 = arith.constant 0.000000e+00 : f32
    %9 = vector.broadcast %cst_6 : f32 to vector<16x128xf32>
    %10 = arith.maximumf %8, %9 : vector<16x128xf32>
    %c0_7 = arith.constant 0 : index
    %c0_8 = arith.constant 0 : index
    %11 = vector.load %arg8[%c0_7, %c0_8] : memref<16x128xf32, #tpu.memory_space<vmem>>, vector<16x128xf32>
    %12 = arith.truncf %10 : vector<16x128xf32> to vector<16x128xbf16>
    %c0_9 = arith.constant 0 : index
    %c0_10 = arith.constant 0 : index
    %13 = vector.load %arg5[%c0_9, %c0_10] : memref<128x128xbf16, #tpu.memory_space<vmem>>, vector<128x128xbf16>
    %cst_11 = arith.constant dense<0.000000e+00> : vector<16x128xf32>
    %14 = tpu.matmul %12, %13, %cst_11 {dimension_numbers = #tpu.dot_dimension_numbers<[1], [0], [0], [1], [0, 0, 1, 1], [], []>} : vector<16x128xbf16>, vector<128x128xbf16>, vector<16x128xf32> -> vector<16x128xf32>
    %15 = arith.addf %11, %14 : vector<16x128xf32>
    %c0_12 = arith.constant 0 : index
    %c0_13 = arith.constant 0 : index
    %16 = vector.load %arg8[%c0_12, %c0_13] : memref<16x128xf32, #tpu.memory_space<vmem>>, vector<16x128xf32>
    tpu.vector_store %arg8[%c0_12, %c0_13], %15 {strides = array<i32>} : memref<16x128xf32, #tpu.memory_space<vmem>>, vector<16x128xf32>,
    %c0_i32_14 = arith.constant 0 : i32
    %17 = arith.cmpi eq, %arg1, %c0_i32_14 : i32
    %18 = arith.extui %17 : i1 to i32
    %c0_i32_15 = arith.constant 0 : i32
    %19 = arith.cmpi ne, %18, %c0_i32_15 : i32
    scf.if %19 {
      %c0_16 = arith.constant 0 : index
      %c0_17 = arith.constant 0 : index
      %20 = vector.load %arg8[%c0_16, %c0_17] : memref<16x128xf32, #tpu.memory_space<vmem>>, vector<16x128xf32>
      %c0_18 = arith.constant 0 : index
      %c0_19 = arith.constant 0 : index
      %21 = vector.load %arg6[%c0_18, %c0_19] : memref<1x128xf32, #tpu.memory_space<vmem>>, vector<1x128xf32>
      %22 = vector.broadcast %21 : vector<1x128xf32> to vector<16x128xf32>
      %23 = arith.addf %20, %22 : vector<16x128xf32>
      %24 = arith.truncf %23 : vector<16x128xf32> to vector<16x128xbf16>
      %c0_20 = arith.constant 0 : index
      %c0_21 = arith.constant 0 : index
      %25 = vector.load %arg7[%c0_20, %c0_21] : memref<16x128xbf16, #tpu.memory_space<vmem>>, vector<16x128xbf16>
      tpu.vector_store %arg7[%c0_20, %c0_21], %24 {strides = array<i32>} : memref<16x128xbf16, #tpu.memory_space<vmem>>, vector<16x128xbf16>,
    } else {
    }
    return
  }
  func.func @transform_0(%arg0: i32, %arg1: i32) -> (i32, i32) {
    %c0_i32 = arith.constant 0 : i32
    %c0_i32_0 = arith.constant 0 : i32
    return %arg0, %c0_i32 : i32, i32
  }
  func.func @transform_1(%arg0: i32, %arg1: i32) -> (i32, i32) {
    %c0_i32 = arith.constant 0 : i32
    %c0_i32_0 = arith.constant 0 : i32
    return %c0_i32, %arg1 : i32, i32
  }
  func.func @transform_2(%arg0: i32, %arg1: i32) -> (i32, i32) {
    %c0_i32 = arith.constant 0 : i32
    %c0_i32_0 = arith.constant 0 : i32
    return %c0_i32, %arg1 : i32, i32
  }
  func.func @transform_3(%arg0: i32, %arg1: i32) -> (i32, i32) {
    %c0_i32 = arith.constant 0 : i32
    %c0_i32_0 = arith.constant 0 : i32
    return %arg1, %c0_i32 : i32, i32
  }
  func.func @transform_4(%arg0: i32, %arg1: i32) -> (i32, i32) {
    %c0_i32 = arith.constant 0 : i32
    %c0_i32_0 = arith.constant 0 : i32
    %c0_i32_1 = arith.constant 0 : i32
    return %c0_i32, %c0_i32_0 : i32, i32
  }
  func.func @transform_5(%arg0: i32, %arg1: i32) -> (i32, i32) {
    %c0_i32 = arith.constant 0 : i32
    %c0_i32_0 = arith.constant 0 : i32
    return %arg0, %c0_i32 : i32, i32
  }
}

</mosaic_0001>

<bundles_post_ra>
// kernel: tpu_custom_call.1
= control target key start
LH: loop header
LB: loop body
LE: loop exit
PB: predicated region body
PF: predicated region fallthrough
CT: control target
= control target key end

     0   :  { %10 = vsyncpa [#allocation4], 0  ;;  %s552_s0 = inlined_call_operand.hbm [shape: bf16[16,128], index: 0, kind: input, shape index: {}]   ;;  %s553_s1 = inlined_call_operand.hbm [shape: bf16[128,128], index: 1, kind: input, shape index: {}]   ;;  %s554_s2 = inlined_call_operand.vmem [shape: f32[1,128], index: 2, kind: input, shape index: {}]   ;;  %s555_s3 = inlined_call_operand.hbm [shape: bf16[128,128], index: 3, kind: input, shape index: {}]   ;;  %s556_s4 = inlined_call_operand.vmem [shape: f32[1,128], index: 4, kind: input, shape index: {}]   ;;  %s557_s5 = inlined_call_operand.hbm [shape: bf16[16,128], index: 5, kind: output, shape index: {}]  }
   0x1   :  { %11 = vsyncpa [#allocation7], 0 }
   0x2   :  { %12 = vsyncpa [#allocation5], 0  ;;  %s30_s20 = sshll.u32 %s553_s1, 4  ;;  %s486_s21 = smov [#allocation6]   ;;  %s31_s20 = int_to_ptr.hbm [resolvable:$true] %s30_s20 }
   0x3   :  { %s32_s22 = sshll.u32 %s486_s21, 4  ;;  %s17_s25 = sshll.u32 %s552_s0, 4  ;;  %s33_s22 = int_to_ptr.vmem [resolvable:$true] %s32_s22  ;;  %s18_s25 = int_to_ptr.hbm [resolvable:$true] %s17_s25 }
   0x4   :  { %s487_s26 = smov 64   ;;  %s488_s27 = smov 4  }
   0x5   :  { %38 = dma.hbm_to_vmem [thread:$0]  %s31_s20, 1024, %s33_s22, [#allocation7], %s487_s26, %s487_s26, %s488_s27  }
   0x6   :  { %s489_s28 = smov [#allocation3]   ;;  %s45_s1 = sshll.u32 %s555_s3, 4  ;;  %s46_s1 = int_to_ptr.hbm [resolvable:$true] %s45_s1 }
   0x7   :  { %s19_s29 = sshll.u32 %s489_s28, 4  ;;  %s490_s0 = smov [#allocation8]   ;;  %s20_s29 = int_to_ptr.vmem [resolvable:$true] %s19_s29 }
   0x8   :  { %25 = dma.hbm_to_vmem [thread:$0]  %s18_s25, 128, %s20_s29, [#allocation4], %s487_s26, %s487_s26, %s488_s27  }
   0x9   :  { %s47_s7 = sshll.u32 %s490_s0, 4  ;;  %s48_s7 = int_to_ptr.vmem [resolvable:$true] %s47_s7 }
   0xa   :  { %53 = dma.hbm_to_vmem [thread:$0]  %s46_s1, 1024, %s48_s7, [#allocation7], %s487_s26, %s487_s26, %s488_s27  }
   0xb   :  { %480 = dma.done.wait [#allocation4], 128  }
   0xc   :  { %481 = vsyncadd [#allocation4], 4294967168 }
   0xd   :  { %482 = dma.done.wait [#allocation7], 2048  }
   0xe   :  { %483 = vsyncadd [#allocation7], 4294965248  ;;  %v362_v0 = vld [vmem:[#allocation6 + $0x38] sm:$0xff]  ;;  %v361_v1 = vld [vmem:[#allocation6 + $0x30] sm:$0xff]  ;;  %s491_s11 = smov [#allocation9]   ;;  %s272_s15 = sshll.u32 %s557_s5, 4  ;;  %s273_s15 = int_to_ptr.hbm [resolvable:$true] %s272_s15 }
   0xf   :  { %150 = vmatpush.bf16.msra.mxu0 %v362_v0  ;;  %v370_v2 = vld [vmem:[#allocation8 + $0x38] sm:$0xff]  ;;  %v369_v3 = vld [vmem:[#allocation8 + $0x30] sm:$0xff]  ;;  %v360_v4 = vld [vmem:[#allocation6 + $0x28] sm:$0xff]  ;;  %s270_s12 = sshll.u32 %s491_s11, 4  ;;  %s271_s12 = int_to_ptr.vmem [resolvable:$true] %s270_s12 }
  0x10   :  { %233 = vmatpush.bf16.msra.mxu1 %v370_v2  ;;  %v368_v5 = vld [vmem:[#allocation8 + $0x28] sm:$0xff]  ;;  %v359_v6 = vld [vmem:[#allocation6 + $0x20] sm:$0xff]  ;;  %v358_v8 = vld [vmem:[#allocation6 + $0x18] sm:$0xff] }
  0x11   :  { %v367_v7 = vld [vmem:[#allocation8 + $0x20] sm:$0xff]  ;;  %v357_v9 = vld [vmem:[#allocation6 + $0x10] sm:$0xff]  ;;  %v356_v10 = vld [vmem:[#allocation6 + $0x8] sm:$0xff] }
  0x12   :  { %v355_v11 = vld [vmem:[#allocation6] sm:$0xff]  ;;  %v354_v12 = vld [vmem:[#allocation3] sm:$0xff]  ;;  %v365_v14 = vld [vmem:[#allocation8 + $0x10] sm:$0xff] }
  0x13   :  { %151 = vmatpush.bf16.msra.mxu0 %v361_v1  ;;  %v366_v13 = vld [vmem:[#allocation8 + $0x18] sm:$0xff]  ;;  %v364_v15 = vld [vmem:[#allocation8 + $0x8] sm:$0xff]  ;;  %v363_v16 = vld [vmem:[#allocation8] sm:$0xff] }
  0x14   :  { %234 = vmatpush.bf16.msra.mxu1 %v369_v3  ;;  %v382_v18 = vld [vmem:[%s554_s2] ss:$0 sm:$0xff] }
  0x15   :  { %v383_v26 = vld [vmem:[%s556_s4] ss:$0 sm:$0xff] }
  0x17   :  { %152 = vmatpush.bf16.msra.mxu0 %v360_v4 }
  0x18   :  { %235 = vmatpush.bf16.msra.mxu1 %v368_v5 }
  0x1b   :  { %153 = vmatpush.bf16.msra.mxu0 %v359_v6 }
  0x1c   :  { %236 = vmatpush.bf16.msra.mxu1 %v367_v7 }
  0x1f   :  { %154 = vmatpush.bf16.msra.mxu0 %v358_v8 }
  0x20   :  { %237 = vmatpush.bf16.msra.mxu1 %v366_v13 }
  0x23   :  { %155 = vmatpush.bf16.msra.mxu0 %v357_v9 }
  0x24   :  { %238 = vmatpush.bf16.msra.mxu1 %v365_v14 }
  0x27   :  { %156 = vmatpush.bf16.msra.mxu0 %v356_v10 }
  0x28   :  { %239 = vmatpush.bf16.msra.mxu1 %v364_v15 }
  0x2b   :  { %157 = vmatpush.bf16.msra.mxu0 %v355_v11 }
  0x2c   :  { %240 = vmatpush.bf16.msra.mxu1 %v363_v16 }
  0x2e   :  { %158 = vmatmul.bf16.vlgmr.msra.gmra.mxu0 %v354_v12 }
  0xab   :  { %v159_v17 = vpop.f32.mrf.mxu0 }
  0xac   :  { %v160_v19 = vadd.f32 %v382_v18, %v159_v17 }
  0xae   :  { %v164_v22 = vmax.f32 %v160_v19, 0.0 }
  0xb3   :  { %v161_v20 = vpop.f32.mrf.mxu0 }
  0xb4   :  { %v162_v21 = vadd.f32 %v382_v18, %v161_v20 }
  0xb6   :  { %v165_v23 = vmax.f32 %v162_v21, 0.0 }
  0xb8   :  { %v168_v24 = vpack.c.bf16 %v165_v23, %v164_v22 }
  0xba   :  { %241 = vmatmul.bf16.vlgmr.msra.gmra.mxu1 %v168_v24 }
 0x137   :  { %v242_v25 = vpop.f32.mrf.mxu1 }
 0x138   :  { %v260_v28 = vadd.f32 %v383_v26, %v242_v25 }
 0x13f   :  { %v244_v27 = vpop.f32.mrf.mxu1 }
 0x140   :  { %v261_v29 = vadd.f32 %v383_v26, %v244_v27 }
 0x142   :  { %v374_v30 = vpack.c.bf16 %v261_v29, %v260_v28 }
 0x144   :  { %375 = vst [vmem:[#allocation9] sm:$0xff] %v374_v30  }
 0x145   :  { %278 = dma.vmem_to_hbm [thread:$0]  %s271_s12, 128, %s273_s15, [#allocation5], %s487_s26, %s487_s26, %s488_s27  }
 0x146   :  { %484 = dma.done.wait [#allocation5], 128  }
 0x147   :  { %485 = vsyncadd [#allocation5], 4294967168 }
 0x148   :  { %283 = vsyncpa [#allocation4], 1 }
 0x149   :  { %284 = vsyncpa [#allocation7], 1 }
 0x14a   :  { %285 = vsyncpa [#allocation5], 1 }

</bundles_post_ra>
